<compile_context>
chip_gen: v6e
topology: v6e:2x2x1
jax: 0.10.0
libtpu: 0.0.40
codegen_flags: <defaults>
</compile_context>

<pallas_src>
import functools
import math

import jax
import jax.numpy as jnp
from jax import lax
from jax.experimental import pallas as pl
from jax.experimental.pallas import tpu as pltpu


# ---------------------------------------------------------------------------
# In-kernel helpers
# ---------------------------------------------------------------------------
def _bucket_mod_c(row, C):
    """row: (Bt, W) f32, W % C == 0 -> (Bt, C) with out[b,c] = sum_{j % C == c} row[b,j].

    Lane-halving fold: while the half-width stays a multiple of C, add the two
    halves (this preserves j % C).  Any residual odd factor is combined with an
    unrolled static-slice sum.  Pure VPU/XLU work: no iota/mod selector temps and
    no degenerate MXU matmul.
    """
    w = row.shape[-1]
    while w > C and w % (2 * C) == 0:
        w //= 2
        row = row[:, :w] + row[:, w:2 * w]
    if w > C:
        acc = row[:, 0:C]
        for r in range(1, w // C):
            acc = acc + row[:, r * C:(r + 1) * C]
        row = acc
    return row


def _fc_scale(s, w1_ref, w2_ref):
    """s: (Bt, C) f32 -> sigmoid(relu(s @ w1.T) @ w2.T): (Bt, C) f32."""
    h = jnp.maximum(
        lax.dot_general(s, w1_ref[...].astype(jnp.float32),
                        (((1,), (1,)), ((), ())),
                        preferred_element_type=jnp.float32), 0.0)
    return jax.nn.sigmoid(
        lax.dot_general(h, w2_ref[...].astype(jnp.float32),
                        (((1,), (1,)), ((), ())),
                        preferred_element_type=jnp.float32))


# ---------------------------------------------------------------------------
# Kernels
# ---------------------------------------------------------------------------
def _waveletatt_fused_kernel(x_ref, w1_ref, w2_ref, o_ref, *, inv_hw2):
    """Single-pass kernel: one (Bt, C, HW) slab per grid step (small / medium C*HW)."""
    C = x_ref.shape[1]
    xb = x_ref[...]                                           # single HBM read of x
    # Channel-axis (sublane) reduce with an f32 accumulator: only the (Bt, HW) row
    # result is widened, never the full tile.
    colsum = jnp.sum(xb, axis=1, dtype=jnp.float32)           # (Bt, HW)
    s = _bucket_mod_c(colsum, C) * inv_hw2                    # (Bt, C) wavelet squeeze
    a = _fc_scale(s, w1_ref, w2_ref)                          # (Bt, C) f32
    # Per-channel rescale; scale stays f32, one cast at the lane-dense store.
    o_ref[...] = (xb * a[:, :, None]).astype(o_ref.dtype)


def _waveletatt_squeeze_kernel(x_ref, w1_ref, w2_ref, a_ref, acc_ref, *, inv_hw2):
    """Pass 1 of the HW-tiled path: accumulate the squeeze over HW tiles, emit the
    (Bt, C) sigmoid scale at the last tile.  Tile width must be a multiple of C."""
    C = x_ref.shape[1]
    t = pl.program_id(1)

    @pl.when(t == 0)
    def _():
        acc_ref[...] = jnp.zeros_like(acc_ref)

    colsum = jnp.sum(x_ref[...], axis=1, dtype=jnp.float32)   # (Bt, Thw)
    acc_ref[...] += _bucket_mod_c(colsum, C)

    @pl.when(t == pl.num_programs(1) - 1)
    def _():
        a_ref[...] = _fc_scale(acc_ref[...] * inv_hw2, w1_ref, w2_ref)


def _waveletatt_scale_kernel(a_ref, x_ref, o_ref):
    """Pass 2 of the HW-tiled path: lane-dense per-channel rescale."""
    o_ref[...] = (x_ref[...] * a_ref[...][:, :, None]).astype(o_ref.dtype)


# ---------------------------------------------------------------------------
# Host-side tiling helpers
# ---------------------------------------------------------------------------
def _pick_batch_block(B, per_batch_bytes, budget_bytes, cap=8):
    """Largest divisor of B fitting the VMEM budget, capped at `cap` and at B//2
    (keeps >= 2 grid steps so both v7x TensorCores stay busy)."""
    max_bt = max(1, int(budget_bytes // max(per_batch_bytes, 1)))
    max_bt = min(max_bt, cap, B)
    if B >= 2:
        max_bt = min(max_bt, max(1, B // 2))
    for bt in range(max_bt, 0, -1):
        if B % bt == 0:
            return bt
    return 1


def _pick_hw_block(HW, C, itemsize, target_bytes=2 << 20):
    """Largest divisor of HW that is a multiple of lcm(C, 128) (mod-C-safe and
    lane-dense) and roughly target_bytes per channel-full tile; falls back to HW."""
    target = max(C, target_bytes // max(C * itemsize, 1))
    step = C * 128 // math.gcd(C, 128)
    best = None
    d = step
    limit = min(HW, max(target, step))
    while d <= limit:
        if HW % d == 0:
            best = d
        d += step
    return best if best is not None else HW


# ---------------------------------------------------------------------------
# Public wrapper
# ---------------------------------------------------------------------------
def waveletatt_forward(x, w1, w2, *, batch_block=None, hw_block=None,
                       alias_input=False):
    """y = x * sigmoid(fc2(relu(fc1(wavelet_squeeze(x)))))  (Waveletatt.forward)."""
    B, C, H, W = x.shape
    Ch = w1.shape[0]
    if w1.shape != (Ch, C) or w2.shape != (C, Ch):
        raise ValueError("w1 must be (C//2, C) and w2 (C, C//2) (PyTorch Linear layout)")
    HW = H * W
    if HW % C:
        # TODO(synk): HW % C != 0 would need a per-row ((row*HW) % C) shift in the
        # column bucketing; not required for this module's configurations.
        raise NotImplementedError("waveletatt_forward requires H*W % C == 0")

    x2 = jnp.reshape(x, (B, C, HW))     # contiguous NCHW -> free reinterpretation
    itemsize = jnp.dtype(x.dtype).itemsize
    inv_hw2 = 2.0 / HW
    w_bytes = (w1.size * jnp.dtype(w1.dtype).itemsize
               + w2.size * jnp.dtype(w2.dtype).itemsize)
    per_batch_bytes = C * HW * itemsize

    # Above this per-batch slab size the single-pass layout no longer double-buffers
    # comfortably inside v7x's 64 MiB VMEM -> use the HW-tiled two-pass structure.
    fused_slab_limit = 8 << 20
    use_tiled = hw_block is not None or per_batch_bytes > fused_slab_limit

    if not use_tiled:
        bt = batch_block if batch_block is not None else _pick_batch_block(
            B, per_batch_bytes, fused_slab_limit)
        if B % bt:
            raise ValueError("batch_block must divide the batch size")
        block_bytes = bt * per_batch_bytes
        vmem_limit = int(min(64 << 20, max(32 << 20, 5 * block_bytes)))
        cost = pl.CostEstimate(
            flops=int(4 * B * C * HW + 4 * B * C * Ch),
            transcendentals=int(B * C),
            bytes_accessed=int(2 * B * C * HW * itemsize + w_bytes),
        )
        out = pl.pallas_call(
            functools.partial(_waveletatt_fused_kernel, inv_hw2=inv_hw2),
            out_shape=jax.ShapeDtypeStruct((B, C, HW), x.dtype),
            grid_spec=pltpu.PrefetchScalarGridSpec(
                num_scalar_prefetch=0,
                grid=(B // bt,),
                in_specs=[
                    pl.BlockSpec((bt, C, HW), lambda b: (b, 0, 0)),  # x: single HBM read
                    pl.BlockSpec((Ch, C), lambda b: (0, 0)),         # fc1 weight, resident
                    pl.BlockSpec((C, Ch), lambda b: (0, 0)),         # fc2 weight, resident
                ],
                out_specs=pl.BlockSpec((bt, C, HW), lambda b: (b, 0, 0)),
            ),
            compiler_params=pltpu.CompilerParams(
                dimension_semantics=("parallel",),
                vmem_limit_bytes=vmem_limit,
            ),
            cost_estimate=cost,
            input_output_aliases=({0: 0} if alias_input else {}),
        )(x2, w1, w2)
        return jnp.reshape(out, (B, C, H, W))

    # ------------- HW-tiled two-pass path (large C*HW; required on v7x) -------------
    thw = hw_block if hw_block is not None else _pick_hw_block(HW, C, itemsize)
    if HW % thw or thw % C:
        raise ValueError("hw_block must divide H*W and be a multiple of C")
    if thw != HW and thw % 128:
        raise ValueError("hw_block must be a multiple of 128 lanes or the full H*W")
    bt = batch_block if batch_block is not None else _pick_batch_block(
        B, C * thw * itemsize, 4 << 20)
    if B % bt:
        raise ValueError("batch_block must divide the batch size")
    nb, nt = B // bt, HW // thw
    block_bytes = bt * C * thw * itemsize
    vmem_limit = int(min(64 << 20, max(32 << 20, 5 * block_bytes)))

    squeeze_cost = pl.CostEstimate(
        flops=int(2 * B * C * HW + 4 * B * C * Ch),
        transcendentals=int(B * C),
        bytes_accessed=int(B * C * HW * itemsize + w_bytes + B * C * 4),
    )
    scale = pl.pallas_call(
        functools.partial(_waveletatt_squeeze_kernel, inv_hw2=inv_hw2),
        out_shape=jax.ShapeDtypeStruct((B, C), jnp.float32),
        grid_spec=pltpu.PrefetchScalarGridSpec(
            num_scalar_prefetch=0,
            grid=(nb, nt),
            in_specs=[
                pl.BlockSpec((bt, C, thw), lambda b, t: (b, 0, t)),
                pl.BlockSpec((Ch, C), lambda b, t: (0, 0)),
                pl.BlockSpec((C, Ch), lambda b, t: (0, 0)),
            ],
            out_specs=pl.BlockSpec((bt, C), lambda b, t: (b, 0)),
            scratch_shapes=[pltpu.VMEM((bt, C), jnp.float32)],
        ),
        compiler_params=pltpu.CompilerParams(
            dimension_semantics=("parallel", "arbitrary"),
            vmem_limit_bytes=vmem_limit,
        ),
        cost_estimate=squeeze_cost,
    )(x2, w1, w2)

    scale_cost = pl.CostEstimate(
        flops=int(B * C * HW),
        transcendentals=0,
        bytes_accessed=int(2 * B * C * HW * itemsize + B * C * 4),
    )
    out = pl.pallas_call(
        _waveletatt_scale_kernel,
        out_shape=jax.ShapeDtypeStruct((B, C, HW), x.dtype),
        grid_spec=pltpu.PrefetchScalarGridSpec(
            num_scalar_prefetch=0,
            grid=(nb, nt),
            in_specs=[
                pl.BlockSpec((bt, C), lambda b, t: (b, 0)),          # per-channel scale
                pl.BlockSpec((bt, C, thw), lambda b, t: (b, 0, t)),  # x tile
            ],
            out_specs=pl.BlockSpec((bt, C, thw), lambda b, t: (b, 0, t)),
        ),
        compiler_params=pltpu.CompilerParams(
            dimension_semantics=("parallel", "parallel"),
            vmem_limit_bytes=vmem_limit,
        ),
        cost_estimate=scale_cost,
        input_output_aliases=({1: 0} if alias_input else {}),
    )(scale, x2)
    return jnp.reshape(out, (B, C, H, W))


# ---------------------------------------------------------------------------
# Pure-JAX reference (literal view/permute/upsample/Haar-DWT path)
# ---------------------------------------------------------------------------
def waveletatt_reference(x, w1, w2):
    B, C, H, W = x.shape
    xv = jnp.transpose(jnp.reshape(x, (B, H, W, C)), (0, 3, 2, 1))   # (B, C, W, H)
    up = jnp.repeat(jnp.repeat(xv, 2, axis=2), 2, axis=3)            # nearest 2x upsample
    ll = 0.5 * (up[:, :, 0::2, 0::2] + up[:, :, 0::2, 1::2]
                + up[:, :, 1::2, 0::2] + up[:, :, 1::2, 1::2])       # Haar LL subband
    # LH/HL/HH are identically zero after nearest upsampling.
    s = jnp.mean(ll, axis=(2, 3))                                    # (B, C) global avg pool
    h = jax.nn.relu(s @ w1.T)
    a = jax.nn.sigmoid(h @ w2.T)
    return x * a[:, :, None, None]


if __name__ == "__main__":
    key = jax.random.PRNGKey(0)
    kx, k1, k2 = jax.random.split(key, 3)

    # ---- small test, single-pass (fused) path: B=2, C=8, 16x16 spatial ----
    B, C, H, W = 2, 8, 16, 16
    x = jax.random.normal(kx, (B, C, H, W), jnp.float32)
    w1 = jax.random.normal(k1, (C // 2, C), jnp.float32) * (1.0 / math.sqrt(C))
    w2 = jax.random.normal(k2, (C, C // 2), jnp.float32) * (1.0 / math.sqrt(C // 2))

    y_ref = waveletatt_reference(x, w1, w2)
    y = jax.block_until_ready(waveletatt_forward(x, w1, w2))
    assert y.shape == x.shape and y.dtype == x.dtype
    assert jnp.allclose(y, y_ref, atol=1e-5, rtol=1e-5), float(jnp.max(jnp.abs(y - y_ref)))

    # ---- forced HW-tiled (two-pass) path: exercises the large-C*HW structure ----
    B2, C2, H2, W2 = 2, 8, 32, 32
    xl = jax.random.normal(kx, (B2, C2, H2, W2), jnp.float32)
    w1b = jax.random.normal(k1, (C2 // 2, C2), jnp.float32) * (1.0 / math.sqrt(C2))
    w2b = jax.random.normal(k2, (C2, C2 // 2), jnp.float32) * (1.0 / math.sqrt(C2 // 2))
    y2_ref = waveletatt_reference(xl, w1b, w2b)
    y2 = jax.block_until_ready(waveletatt_forward(xl, w1b, w2b, hw_block=256))
    assert y2.shape == xl.shape and y2.dtype == xl.dtype
    assert jnp.allclose(y2, y2_ref, atol=1e-5, rtol=1e-5), float(jnp.max(jnp.abs(y2 - y2_ref)))

    print("KERNEL_OK")
</pallas_src>

<mosaic_0001>
module attributes {stable_mosaic.version = 11 : i64} {
  func.func @_waveletatt_fused_kernel(%arg0: i32, %arg1: memref<1x8x256xf32, #tpu.memory_space<vmem>>, %arg2: memref<4x8xf32, #tpu.memory_space<vmem>>, %arg3: memref<8x4xf32, #tpu.memory_space<vmem>>, %arg4: memref<1x8x256xf32, #tpu.memory_space<vmem>>) attributes {dimension_semantics = [#tpu.dimension_semantics<parallel>], iteration_bounds = array<i64: 2>, scalar_prefetch = 0 : i64, scratch_operands = 0 : i64, tpu.core_type = #tpu.core_type<tc>, window_params = [{transform_indices = @transform_0, window_bounds = array<i64: 1, 8, 256>}, {pipeline_mode = #tpu.pipeline_mode<synchronous>, transform_indices = @transform_1, window_bounds = array<i64: 4, 8>}, {pipeline_mode = #tpu.pipeline_mode<synchronous>, transform_indices = @transform_2, window_bounds = array<i64: 8, 4>}, {transform_indices = @transform_3, window_bounds = array<i64: 1, 8, 256>}]} {
    %c0 = arith.constant 0 : index
    %c0_0 = arith.constant 0 : index
    %c0_1 = arith.constant 0 : index
    %0 = vector.load %arg1[%c0, %c0_0, %c0_1] : memref<1x8x256xf32, #tpu.memory_space<vmem>>, vector<1x8x256xf32>
    %cst = arith.constant dense<0.000000e+00> : vector<1x256xf32>
    %1 = vector.multi_reduction <add>, %0, %cst [1] : vector<1x8x256xf32> to vector<1x256xf32>
    %2 = vector.extract_strided_slice %1 {offsets = [0, 0], sizes = [1, 128], strides = [1, 1]} : vector<1x256xf32> to vector<1x128xf32>
    %3 = vector.extract_strided_slice %1 {offsets = [0, 128], sizes = [1, 128], strides = [1, 1]} : vector<1x256xf32> to vector<1x128xf32>
    %4 = arith.addf %2, %3 : vector<1x128xf32>
    %5 = vector.extract_strided_slice %4 {offsets = [0, 0], sizes = [1, 64], strides = [1, 1]} : vector<1x128xf32> to vector<1x64xf32>
    %6 = vector.extract_strided_slice %4 {offsets = [0, 64], sizes = [1, 64], strides = [1, 1]} : vector<1x128xf32> to vector<1x64xf32>
    %7 = arith.addf %5, %6 : vector<1x64xf32>
    %8 = vector.extract_strided_slice %7 {offsets = [0, 0], sizes = [1, 32], strides = [1, 1]} : vector<1x64xf32> to vector<1x32xf32>
    %9 = vector.extract_strided_slice %7 {offsets = [0, 32], sizes = [1, 32], strides = [1, 1]} : vector<1x64xf32> to vector<1x32xf32>
    %10 = arith.addf %8, %9 : vector<1x32xf32>
    %11 = vector.extract_strided_slice %10 {offsets = [0, 0], sizes = [1, 16], strides = [1, 1]} : vector<1x32xf32> to vector<1x16xf32>
    %12 = vector.extract_strided_slice %10 {offsets = [0, 16], sizes = [1, 16], strides = [1, 1]} : vector<1x32xf32> to vector<1x16xf32>
    %13 = arith.addf %11, %12 : vector<1x16xf32>
    %14 = vector.extract_strided_slice %13 {offsets = [0, 0], sizes = [1, 8], strides = [1, 1]} : vector<1x16xf32> to vector<1x8xf32>
    %15 = vector.extract_strided_slice %13 {offsets = [0, 8], sizes = [1, 8], strides = [1, 1]} : vector<1x16xf32> to vector<1x8xf32>
    %16 = arith.addf %14, %15 : vector<1x8xf32>
    %cst_2 = arith.constant 7.812500e-03 : f32
    %17 = vector.broadcast %cst_2 : f32 to vector<1x8xf32>
    %18 = arith.mulf %16, %17 : vector<1x8xf32>
    %c0_3 = arith.constant 0 : index
    %c0_4 = arith.constant 0 : index
    %19 = vector.load %arg2[%c0_3, %c0_4] : memref<4x8xf32, #tpu.memory_space<vmem>>, vector<4x8xf32>
    %cst_5 = arith.constant dense<0.000000e+00> : vector<1x4xf32>
    %20 = tpu.matmul %18, %19, %cst_5 {dimension_numbers = #tpu.dot_dimension_numbers<[1], [1], [0], [0], [0, 0, 1, 0], [], []>} : vector<1x8xf32>, vector<4x8xf32>, vector<1x4xf32> -> vector<1x4xf32>
    %cst_6 = arith.constant 0.000000e+00 : f32
    %21 = vector.broadcast %cst_6 : f32 to vector<1x4xf32>
    %22 = arith.maximumf %20, %21 : vector<1x4xf32>
    %c0_7 = arith.constant 0 : index
    %c0_8 = arith.constant 0 : index
    %23 = vector.load %arg3[%c0_7, %c0_8] : memref<8x4xf32, #tpu.memory_space<vmem>>, vector<8x4xf32>
    %cst_9 = arith.constant dense<0.000000e+00> : vector<1x8xf32>
    %24 = tpu.matmul %22, %23, %cst_9 {dimension_numbers = #tpu.dot_dimension_numbers<[1], [1], [0], [0], [0, 0, 1, 0], [], []>} : vector<1x4xf32>, vector<8x4xf32>, vector<1x8xf32> -> vector<1x8xf32>
    %25 = arith.negf %24 : vector<1x8xf32>
    %26 = math.exp %25 : vector<1x8xf32>
    %cst_10 = arith.constant 1.000000e+00 : f32
    %27 = vector.broadcast %cst_10 : f32 to vector<1x8xf32>
    %28 = arith.addf %27, %26 : vector<1x8xf32>
    %29 = arith.divf %27, %28 : vector<1x8xf32>
    %30 = vector.shape_cast %29 : vector<1x8xf32> to vector<1x8x1xf32>
    %31 = vector.broadcast %30 : vector<1x8x1xf32> to vector<1x8x256xf32>
    %32 = arith.mulf %0, %31 : vector<1x8x256xf32>
    %c0_11 = arith.constant 0 : index
    %c0_12 = arith.constant 0 : index
    %c0_13 = arith.constant 0 : index
    %33 = vector.load %arg4[%c0_11, %c0_12, %c0_13] : memref<1x8x256xf32, #tpu.memory_space<vmem>>, vector<1x8x256xf32>
    tpu.vector_store %arg4[%c0_11, %c0_12, %c0_13], %32 {strides = array<i32>} : memref<1x8x256xf32, #tpu.memory_space<vmem>>, vector<1x8x256xf32>,
    return
  }
  func.func @transform_0(%arg0: i32) -> (i32, i32, i32) {
    %c0_i32 = arith.constant 0 : i32
    %c0_i32_0 = arith.constant 0 : i32
    %c0_i32_1 = arith.constant 0 : i32
    return %arg0, %c0_i32, %c0_i32_0 : i32, i32, i32
  }
  func.func @transform_1(%arg0: i32) -> (i32, i32) {
    %c0_i32 = arith.constant 0 : i32
    %c0_i32_0 = arith.constant 0 : i32
    %c0_i32_1 = arith.constant 0 : i32
    return %c0_i32, %c0_i32_0 : i32, i32
  }
  func.func @transform_2(%arg0: i32) -> (i32, i32) {
    %c0_i32 = arith.constant 0 : i32
    %c0_i32_0 = arith.constant 0 : i32
    %c0_i32_1 = arith.constant 0 : i32
    return %c0_i32, %c0_i32_0 : i32, i32
  }
  func.func @transform_3(%arg0: i32) -> (i32, i32, i32) {
    %c0_i32 = arith.constant 0 : i32
    %c0_i32_0 = arith.constant 0 : i32
    %c0_i32_1 = arith.constant 0 : i32
    return %arg0, %c0_i32, %c0_i32_0 : i32, i32, i32
  }
}

</mosaic_0001>

<bundles_post_ra>
// kernel: tpu_custom_call.1
= control target key start
LH: loop header
LB: loop body
LE: loop exit
PB: predicated region body
PF: predicated region fallthrough
CT: control target
= control target key end

     0   :  { %8 = vsyncpa [#allocation3], 0  ;;  %s862_s0 = inlined_call_operand.hbm [shape: f32[2,8,256], index: 0, kind: input, shape index: {}]   ;;  %s863_s1 = inlined_call_operand.vmem [shape: f32[4,8], index: 1, kind: input, shape index: {}]   ;;  %s864_s2 = inlined_call_operand.vmem [shape: f32[8,4], index: 2, kind: input, shape index: {}]   ;;  %s865_s3 = inlined_call_operand.hbm [shape: f32[2,8,256], index: 3, kind: output, shape index: {}]  }
   0x1   :  { %10 = vsyncpa [#allocation3 + $0x1], 0 }
   0x2   :  { %11 = vsyncpa [#allocation4], 0 }
   0x3   :  { %13 = vsyncpa [#allocation4 + $0x1], 0  ;;  %s695_s12 = smov 0   ;;  %s697_s13 = smov 0  }
   0x4   :  { %s699_s14 = smov 0   ;;  %s701_s15 = smov 0  }
   0x5 LB: > { %s716_s16 = sadd.s32 4294967295, %s665_s15   ;;  %s482_s17 = sadd.s32 4294967294, %s665_s15   ;;  %s665_s15 = sphi %s701_s15, %s882_s15   ;;  %s661_s14 = sphi %s699_s14, %s881_s14   ;;  %s657_s13 = sphi %s697_s13, %s880_s13   ;;  %s653_s12 = sphi %s695_s12, %s879_s12  }
   0x6   : > { %s720_s18 = sadd.s32 1, %s665_s15   ;;  %s26_s19 = sadd.s32 1, %s661_s14 }
   0x7   : > { %s23_s20 = ssub.s32 %s665_s15, %s720_s18  ;;  %p33_p0 = scmp.ne.s32.totalorder %s661_s14, %s657_s13 }
   0x8   : > { %p24_p1 = scmp.eq.s32.totalorder %s23_s20, 0  ;;  %p34_p2 = scmp.eq.s32.totalorder %s665_s15, 0 }
   0x9   : > { %p39_p3 = scmp.ne.s32.totalorder %s657_s13, %s653_s12  ;;  %p40_p4 = scmp.eq.s32.totalorder %s716_s16, 0 }
   0xa   : > { %s732_s21 = scalar_select %p24_p1, %s661_s14, %s26_s19  }
   0xb   : > { %p734_p5 = por %p34_p2, %p33_p0  ;;  %p738_p6 = por %p40_p4, %p39_p3 }
   0xc   : > { %p105_p7 = scmp.eq.s32.totalorder %s716_s16, 1  ;;  %p111_p8 = scmp.eq.s32.totalorder %s482_s17, 1 }
   0xd   : > { %s869_s23 = scalar_select %p738_p6, 1, 0 }
   0xe   : > { %p529_p10 = scmp.lt.s32.totalorder %s665_s15, 2  ;;  %p745_p11 = por %p105_p7, %p33_p0 }
   0xf   : > { %p749_p12 = por %p111_p8, %p39_p3  ;;  %s137_s26 = sand.u32 1, %s661_s14  }
  0x10   : > { %s870_s24 = scalar_select %p745_p11, 1, 0 }
  0x11   : > { %s871_s25 = scalar_select %p749_p12, 1, 0 }
  0x12   : > { %s501_s27 = sshll.u32 %s665_s15, 8  ;;  %s485_s28 = sshll.u32 %s137_s26, 4 }
  0x13   : > { %s758_s4 = scalar_lea.hbm %s862_s0, %s501_s27  ;;  %s141_s5 = scalar_lea.vmem [#allocation2], %s485_s28 }
  0x14   : > { %s149_s6 = sshll.u32 %s141_s5, 4  ;;  %p762_p13 = pnand %p529_p10, %p734_p5  ;;  %s766_s6 = int_to_ptr.vmem [resolvable:$true] %s149_s6 }
  0x15   : > { %s138_s8 = scalar_lea.sflag [#allocation3], %s137_s26  ;;  %s573_s9 = scalar_lea.hbm %s758_s4, 256 }
  0x16   : > { %p574_p2 = scmp.ne.s32.totalorder %s758_s4, %s573_s9  ;;  %p575_p3 = pneg %p762_p13 }
  0x17   : > { %s578_s17 = scalar_lea.hbm %s862_s0, 512  ;;  %p579_p5 = scmp.lt.s32.totalorder %s758_s4, %s862_s0 }
  0x18   : > { %p576_p4 = pnand %p575_p3, %p574_p2  ;;  %p580_p8 = scmp.lt.s32.totalorder %s578_s17, %s573_s9 }
  0x1a   : > { %p577_p7 = pneg %p576_p4  ;;  %p581_p10 = por %p580_p8, %p579_p5 }
  0x1c   : > { %p582_p9 = pnand %p581_p10, %p577_p7 }
  0x1e   : > { %585 = shalt.err (!%p582_p9)
}
  0x1f   : > { %s586_s22 = scalar_lea.vmem %s766_s6, 256  ;;  %s667_s26 = smov [#allocation2]  }
  0x20   : > { %p587_p0 = scmp.ne.s32.totalorder %s766_s6, %s586_s22  ;;  %s591_s27 = sshll.u32 %s667_s26, 4  ;;  %s592_s27 = int_to_ptr.vmem [resolvable:$false] %s591_s27 }
  0x21   : > { %s593_s28 = scalar_lea.vmem %s592_s27, 512  ;;  %p594_p4 = scmp.lt.s32.totalorder %s766_s6, %s592_s27 }
  0x22   : > { %p589_p1 = pnand %p587_p0, %p575_p3  ;;  %p595_p12 = scmp.lt.s32.totalorder %s593_s28, %s586_s22 }
  0x24   : > { %p590_p2 = pneg %p589_p1  ;;  %p596_p11 = por %p595_p12, %p594_p4 }
  0x26   : > { %p597_p6 = pnand %p596_p11, %p590_p2 }
  0x28   : > { %600 = shalt.err (!%p597_p6)
}
  0x29   : > { %524 = dma.hbm_to_vmem [thread:$0]  (!%p762_p13), %s758_s4, 256, %s766_s6, %s138_s8  }
  0x2a   : > { %p873_p9 = scmp.lt.s32.totalorder %s665_s15, 3  ;;  %p874_p7 = scmp.ge.s32.totalorder %s665_s15, 1 }
  0x2c   : > { %p155_p0 = pnand %p874_p7, %p873_p9 }
  0x2d   : > { %s793_s29 = sand.u32 (!%p155_p0), 1, %s657_s13   ;;  %p875_p6 = scmp.ne.s32.totalorder (!%p155_p0), %s869_s23, 0 }
  0x2e   : > { %158 = sbr.rel (%p155_p0) target bundleno = 1089 (0x441), region = 32  ;;  %s489_s30 = sshll.u32 (!%p155_p0), %s793_s29, 4 }
  0x2f   : > { %s161_s5 = scalar_lea.sflag (!%p155_p0), [#allocation3], %s793_s29  ;;  %s164_s7 = scalar_lea.vmem (!%p155_p0), [#allocation2], %s489_s30 }
  0x33   : > { %644 = dma.done.wait (%p875_p6), %s161_s5, 256  }
  0x34   : > { %646 = vsyncadd (%p875_p6), %s161_s5, 4294967040  ;;  %v803_v0 = vld [vmem:[%s164_s7] sm:$0xff]  ;;  %v805_v1 = vld [vmem:[%s164_s7 + $0x8] sm:$0xff]  ;;  %s668_s23 = smov 64   ;;  %s669_s4 = smov 96   ;;  %v671_v19 = vmov 0.0   ;;  %v386_v35 = vlaneseq }
  0x35   : > { %v189_v2 = vrot.slane %v803_v0, 4  ;;  %v195_v3 = vrot.slane %v805_v1, 4  ;;  %s670_s6 = smov 112   ;;  %507 = vmatprep.subr.mxu0 %v671_v19  ;;  %v223_v20 = vld [vmem:[%s863_s1] sm:$0xf]  ;;  %vm224_vm0 = vcmask 64512   ;;  %512 = vmatprep.subr.mxu1 %v671_v19 }
  0x36   : > { %508 = vmatpush3.xpose.msk.msra.mxu0 %vm224_vm0, %v223_v20  ;;  %vm672_vm1 = vmmov 0   ;;  %s673_s10 = smov 120   ;;  %v302_v26 = vld [vmem:[%s864_s2] sm:$0xff]  ;;  %vm303_vm2 = vcmask 31744   ;;  %v387_v36 = vshrl.u32 %v386_v35, 7  ;;  %s502_s19 = sshll.u32 %s716_s16, 8 }
  0x37   : > { %v190_v4 = vadd.f32 %v189_v2, %v803_v0  ;;  %v196_v5 = vadd.f32 %v195_v3, %v805_v1  ;;  %509 = vmatprep.mubr.msk.f32.mxu0 %vm672_vm1, %v671_v19  ;;  %514 = vmatprep.mubr.msk.f32.mxu1 %vm672_vm1, %v671_v19  ;;  %s186_s20 = scalar_lea.vmem [#allocation5], %s489_s30  ;;  %s825_s28 = scalar_lea.hbm %s865_s3, %s502_s19 }
  0x38   : > { %513 = vmatpush3.xpose.msk.msra.mxu1 %vm303_vm2, %v302_v26  ;;  %v388_v37 = vsub.s32 0, %v387_v36  ;;  %s412_s22 = sshll.u32 %s186_s20, 4  ;;  %s398_s5 = scalar_lea.sflag [#allocation4], %s793_s29  ;;  %s413_s22 = int_to_ptr.vmem [resolvable:$true] %s412_s22 }
  0x39   : > { %v191_v6 = vrot.slane %v190_v4, 2  ;;  %v197_v7 = vrot.slane %v196_v5, 2  ;;  %s601_s7 = scalar_lea.vmem %s413_s22, 256  ;;  %p876_p12 = scmp.ne.s32.totalorder %s870_s24, 0 }
  0x3a   : > { %p602_p11 = scmp.ne.s32.totalorder %s413_s22, %s601_s7  ;;  %s674_s16 = smov [#allocation5]  }
  0x3b   : > { %v192_v8 = vadd.f32 %v191_v6, %v190_v4  ;;  %v198_v9 = vadd.f32 %v197_v7, %v196_v5  ;;  %s605_s30 = sshll.u32 %s674_s16, 4  ;;  %s606_s30 = int_to_ptr.vmem [resolvable:$false] %s605_s30 }
  0x3c   : > { %p603_p13 = pnand %p602_p11, %p876_p12  ;;  %p608_p3 = scmp.lt.s32.totalorder %s413_s22, %s606_s30 }
  0x3d   : > { %v193_v10 = vrot.slane %v192_v8, 1  ;;  %v199_v11 = vrot.slane %v198_v9, 1 }
  0x3e   : > { %p604_p1 = pneg %p603_p13 }
  0x3f   : > { %v194_v12 = vadd.f32 %v193_v10, %v192_v8  ;;  %v200_v13 = vadd.f32 %v199_v11, %v198_v9 }
  0x41   : > { %v201_v14 = vadd.f32 %v200_v13, %v194_v12 }
  0x43   : > { %203 = vrot.lane.b32.xlu0 %v201_v14, %s668_s23  ;;  %s607_s23 = scalar_lea.vmem %s606_s30, 512 }
  0x44   : > { %p609_p5 = scmp.lt.s32.totalorder %s607_s23, %s601_s7 }
  0x46   : > { %p610_p8 = por %p609_p5, %p608_p3 }
  0x48   : > { %p611_p10 = pnand %p610_p8, %p604_p1 }
  0xb5   : > { %v204_v15 = vpop.permute.xlu0 %203 }
  0xb6   : > { %v206_v16 = vadd.f32 %v204_v15, %v201_v14 }
  0xb8   : > { %208 = vrot.lane.b32.xlu0 %v206_v16, %s669_s4 }
 0x12a   : > { %v209_v17 = vpop.permute.xlu0 %208 }
 0x12b   : > { %v211_v18 = vadd.f32 %v209_v17, %v206_v16 }
 0x12d   : > { %213 = vrot.lane.b32.xlu1 %v211_v18, %s670_s6 }
 0x19f   : > { %v214_v21 = vpop.permute.xlu1 %213 }
 0x1a0   : > { %v216_v22 = vadd.f32 %v214_v21, %v211_v18 }
 0x1a2   : > { %218 = vrot.lane.b32.xlu1 %v216_v22, %s673_s10 }
 0x214   : > { %v219_v23 = vpop.permute.xlu1 %218 }
 0x215   : > { %v221_v24 = vadd.f32 %v219_v23, %v216_v22 }
 0x217   : > { %v222_v25 = vmul.f32 0.0078125, %v221_v24 }
 0x219   : > { %510 = vmatmul.mubr.msk.f32.vlgmr.msra.gmra.mxu0 %vm224_vm0, %v222_v25 }
 0x2d9   : > { %v297_v27 = vpop.f32.mrf.mxu0 }
 0x2da   : > { %v301_v28 = vmax.f32 %v297_v27, 0.0 }
 0x2db   : > { %v511_v29 = vpop.f32.mrf.mxu0 }
 0x2dc   : > { %515 = vmatmul.mubr.msk.f32.vlgmr.msra.gmra.mxu1 %vm303_vm2, %v301_v28 }
 0x39c   : > { %v376_v30 = vpop.f32.mrf.mxu1 }
 0x39d   : > { %v495_v31 = vmul.f32 -1.442695, %v376_v30 }
 0x39e   : > { %v516_v32 = vpop.f32.mrf.mxu1 }
 0x39f   : > { %569 = vpow2.f32 %v495_v31 }
 0x3ac   : > { %v570_v33 = vpop.eup %569 }
 0x3ad   : > { %v383_v34 = vadd.f32 1.0, %v570_v33 }
 0x3af   : > { %571 = vrcp.f32 %v383_v34 }
 0x3bc   : > { %v572_v38 = vpop.eup %571 }
 0x3bd   : > { %v389_v39 = vrot.slane %v572_v38, %v388_v37 }
 0x3bf   : > { %391 = vbcast.lane.b32.xlu0 %v389_v39, 256 }
 0x431   : > { %v392_v40 = vpop.permute.xlu0 %391 }
 0x432   : > { %v393_v41 = vmul.f32 %v392_v40, %v803_v0  ;;  %v394_v42 = vmul.f32 %v392_v40, %v805_v1 }
 0x434   : > { %395 = vst [vmem:[%s186_s20] sm:$0xff] %v393_v41  ;;  %396 = vst [vmem:[%s186_s20 + $0x8] sm:$0xff] %v394_v42 }
 0x435   : > { %614 = shalt.err (!%p611_p10)
}
 0x436   : > { %s615_s4 = scalar_lea.hbm %s825_s28, 256  ;;  %s619_s8 = scalar_lea.hbm %s865_s3, 512 }
 0x437   : > { %p616_p2 = scmp.ne.s32.totalorder %s825_s28, %s615_s4  ;;  %p620_p7 = scmp.lt.s32.totalorder %s825_s28, %s865_s3 }
 0x438   : > { %p621_p0 = scmp.lt.s32.totalorder %s619_s8, %s615_s4 }
 0x439   : > { %p617_p4 = pnand %p616_p2, %p876_p12 }
 0x43a   : > { %p622_p6 = por %p621_p0, %p620_p7 }
 0x43b   : > { %p618_p9 = pneg %p617_p4 }
 0x43d   : > { %p623_p11 = pnand %p622_p6, %p618_p9 }
 0x43f   : > { %626 = shalt.err (!%p623_p11)
}
 0x440   : > { %519 = dma.vmem_to_hbm [thread:$0]  (%p876_p12), %s413_s22, 256, %s825_s28, %s398_s5  }
 0x441 PF: > { %s424_s11 = sand.u32 1, %s653_s12   ;;  %p877_p13 = scmp.ne.s32.totalorder %s871_s25, 0 }
 0x442   : > { %p878_p1 = scmp.ge.s32.totalorder %s665_s15, 2  ;;  %s425_s17 = scalar_lea.sflag [#allocation4], %s424_s11 }
 0x444   : > { %p526_p3 = pnand %p878_p1, %p877_p13 }
 0x446   : > { %p527_p5 = pneg %p526_p3 }
 0x448   : > { %648 = dma.done.wait (%p527_p5), %s425_s17, 256  }
 0x449   : > { %650 = vsyncadd (%p527_p5), %s425_s17, 4294967040  ;;  %p16_p8 = scmp.ge.s32.totalorder %s720_s18, 4   ;;  %s879_s12 = smov %s657_s13 }
 0x44a   : > { %s880_s13 = smov %s661_s14  ;;  %s881_s14 = smov %s732_s21 }
 0x44b   : > { %s882_s15 = smov %s720_s18  ;;  %18 = sbr.rel (!%p16_p8) target bundleno = 5 (0x5), region = 77 }
 0x450   :  { %430 = vsyncpa [#allocation3], 1 }
 0x451   :  { %432 = vsyncpa [#allocation3 + $0x1], 1 }
 0x452   :  { %433 = vsyncpa [#allocation4], 1 }
 0x453   :  { %435 = vsyncpa [#allocation4 + $0x1], 1 }

</bundles_post_ra>
